<compile_context>
chip_gen: v7x
topology: tpu7x:2x2x1
jax: 0.10.0
libtpu: 0.0.40
codegen_flags: <defaults>
</compile_context>

<pallas_src>
import jax
import jax.numpy as jnp
from jax.experimental import pallas as pl
from jax.experimental.pallas import tpu as pltpu


def _round_up(x, m):
    return (x + m - 1) // m * m


def mlp_kernel(x_ref, w1_ref, b1_ref, w2_ref, b2_ref, w3_ref, b3_ref, o_ref):
    # fc1 + ReLU  (f32 accumulation regardless of operand dtype)
    h1 = jnp.dot(x_ref[...], w1_ref[...], preferred_element_type=jnp.float32)
    h1 = jnp.maximum(h1 + b1_ref[...].astype(jnp.float32), 0.0)
    # fc2 + ReLU
    h2 = jnp.dot(h1.astype(w2_ref.dtype), w2_ref[...],
                 preferred_element_type=jnp.float32)
    h2 = jnp.maximum(h2 + b2_ref[...].astype(jnp.float32), 0.0)
    # cls head (no activation)
    cls = jnp.dot(h2.astype(w3_ref.dtype), w3_ref[...],
                  preferred_element_type=jnp.float32)
    o_ref[...] = (cls + b3_ref[...].astype(jnp.float32)).astype(o_ref.dtype)


def mlp_forward(x, w1, b1, w2, b2, w3, b3, *, batch_tile=256, out_dtype=None):
    """x: (B, input_dim); weights pre-transposed to (in, out); biases (1, out)."""
    B, K = x.shape
    H1 = w1.shape[1]
    H2 = w2.shape[1]
    N = w3.shape[1]
    out_dtype = out_dtype or x.dtype

    # --- lane-pad the class dimension to a multiple of 128 (zero columns keep
    #     logits unchanged; unmasked vst instead of vst.msk on 10/128 lanes) ---
    Np = _round_up(N, 128)
    if Np != N:
        w3 = jnp.pad(w3, ((0, 0), (0, Np - N)))
        b3 = jnp.pad(b3, ((0, 0), (0, Np - N)))

    # --- batch tiling: big tiles amortize the ~0.35us/step overhead; pad B so
    #     the grid divides evenly (padded rows are discarded at the end) ---
    TB = min(batch_tile, _round_up(B, 8))
    Bp = _round_up(B, TB)
    if Bp != B:
        x = jnp.pad(x, ((0, Bp - B), (0, 0)))
    grid = (Bp // TB,)

    # Weights/biases: full-array blocks, index_map pinned at block 0 -> they are
    # DMA'd once and stay VMEM-resident across all batch-grid steps.
    resident = lambda a: pl.BlockSpec(a.shape, lambda i: (0,) * a.ndim)

    flops = 2 * Bp * (K * H1 + H1 * H2 + H2 * Np)
    bytes_accessed = int(
        x.size * x.dtype.itemsize
        + sum(a.size * a.dtype.itemsize for a in (w1, b1, w2, b2, w3, b3))
        + Bp * Np * jnp.dtype(out_dtype).itemsize
    )

    out = pl.pallas_call(
        mlp_kernel,
        out_shape=jax.ShapeDtypeStruct((Bp, Np), out_dtype),
        grid=grid,
        in_specs=[
            pl.BlockSpec((TB, K), lambda i: (i, 0)),   # x tile, pipelined
            resident(w1), resident(b1),
            resident(w2), resident(b2),
            resident(w3), resident(b3),
        ],
        out_specs=pl.BlockSpec((TB, Np), lambda i: (i, 0)),
        compiler_params=pltpu.CompilerParams(
            dimension_semantics=("parallel",),       # v7x: shard batch over 2 TCs
            vmem_limit_bytes=64 * 1024 * 1024,       # explicit budget (v7x-safe)
        ),
        cost_estimate=pl.CostEstimate(
            flops=flops, transcendentals=0, bytes_accessed=bytes_accessed),
    )(x, w1, b1, w2, b2, w3, b3)

    # strip batch padding and class-dim padding
    return out[:B, :N]


def init_linear_params(key, in_features, out_features, dtype=jnp.float32):
    """Deterministic init mimicking nn.Linear (uniform +/- 1/sqrt(in))."""
    kw, kb = jax.random.split(key)
    bound = 1.0 / jnp.sqrt(jnp.asarray(in_features, dtype))
    # stored pre-transposed: (in_features, out_features)
    w = jax.random.uniform(kw, (in_features, out_features), dtype,
                           minval=-bound, maxval=bound)
    b = jax.random.uniform(kb, (1, out_features), dtype,
                           minval=-bound, maxval=bound)
    return w, b


if __name__ == "__main__":
    input_dim = 32
    num_class = 10
    batch = 8

    key = jax.random.PRNGKey(0)
    kx, k1, k2, k3 = jax.random.split(key, 4)

    x = jax.random.normal(kx, (batch, input_dim), jnp.float32)
    w1, b1 = init_linear_params(k1, input_dim, 64)
    w2, b2 = init_linear_params(k2, 64, 64)
    w3, b3 = init_linear_params(k3, 64, num_class)

    out = mlp_forward(x, w1, b1, w2, b2, w3, b3)
    jax.block_until_ready(out)

    # reference check in plain JAX (unpadded weights)
    ref = jnp.maximum(x @ w1 + b1, 0.0)
    ref = jnp.maximum(ref @ w2 + b2, 0.0)
    ref = ref @ w3 + b3
    assert out.shape == (batch, num_class)
    assert jnp.allclose(out, ref, atol=1e-5), "mismatch vs reference"

    # also exercise a batch that needs tiling/padding (not a multiple of TB)
    xb = jax.random.normal(kx, (300, input_dim), jnp.float32)
    outb = mlp_forward(xb, w1, b1, w2, b2, w3, b3, batch_tile=256)
    jax.block_until_ready(outb)
    refb = jnp.maximum(xb @ w1 + b1, 0.0)
    refb = jnp.maximum(refb @ w2 + b2, 0.0)
    refb = refb @ w3 + b3
    assert outb.shape == (300, num_class)
    assert jnp.allclose(outb, refb, atol=1e-5), "mismatch vs reference (tiled)"

    print("KERNEL_OK")
</pallas_src>

<mosaic_0001>
module attributes {stable_mosaic.version = 11 : i64} {
  func.func @mlp_kernel(%arg0: i32, %arg1: memref<8x32xf32, #tpu.memory_space<vmem>>, %arg2: memref<32x64xf32, #tpu.memory_space<vmem>>, %arg3: memref<1x64xf32, #tpu.memory_space<vmem>>, %arg4: memref<64x64xf32, #tpu.memory_space<vmem>>, %arg5: memref<1x64xf32, #tpu.memory_space<vmem>>, %arg6: memref<64x128xf32, #tpu.memory_space<vmem>>, %arg7: memref<1x128xf32, #tpu.memory_space<vmem>>, %arg8: memref<8x128xf32, #tpu.memory_space<vmem>>) attributes {dimension_semantics = [#tpu.dimension_semantics<parallel>], iteration_bounds = array<i64: 1>, scalar_prefetch = 0 : i64, scratch_operands = 0 : i64, tpu.core_type = #tpu.core_type<tc>, window_params = [{transform_indices = @transform_0, window_bounds = array<i64: 8, 32>}, {pipeline_mode = #tpu.pipeline_mode<synchronous>, transform_indices = @transform_1, window_bounds = array<i64: 32, 64>}, {pipeline_mode = #tpu.pipeline_mode<synchronous>, transform_indices = @transform_2, window_bounds = array<i64: 1, 64>}, {pipeline_mode = #tpu.pipeline_mode<synchronous>, transform_indices = @transform_3, window_bounds = array<i64: 64, 64>}, {pipeline_mode = #tpu.pipeline_mode<synchronous>, transform_indices = @transform_4, window_bounds = array<i64: 1, 64>}, {pipeline_mode = #tpu.pipeline_mode<synchronous>, transform_indices = @transform_5, window_bounds = array<i64: 64, 128>}, {pipeline_mode = #tpu.pipeline_mode<synchronous>, transform_indices = @transform_6, window_bounds = array<i64: 1, 128>}, {transform_indices = @transform_7, window_bounds = array<i64: 8, 128>}]} {
    %c0 = arith.constant 0 : index
    %c0_0 = arith.constant 0 : index
    %0 = vector.load %arg1[%c0, %c0_0] : memref<8x32xf32, #tpu.memory_space<vmem>>, vector<8x32xf32>
    %c0_1 = arith.constant 0 : index
    %c0_2 = arith.constant 0 : index
    %1 = vector.load %arg2[%c0_1, %c0_2] : memref<32x64xf32, #tpu.memory_space<vmem>>, vector<32x64xf32>
    %cst = arith.constant dense<0.000000e+00> : vector<8x64xf32>
    %2 = tpu.matmul %0, %1, %cst {dimension_numbers = #tpu.dot_dimension_numbers<[1], [0], [0], [1], [0, 0, 1, 1], [], []>} : vector<8x32xf32>, vector<32x64xf32>, vector<8x64xf32> -> vector<8x64xf32>
    %c0_3 = arith.constant 0 : index
    %c0_4 = arith.constant 0 : index
    %3 = vector.load %arg3[%c0_3, %c0_4] : memref<1x64xf32, #tpu.memory_space<vmem>>, vector<1x64xf32>
    %4 = vector.broadcast %3 : vector<1x64xf32> to vector<8x64xf32>
    %5 = arith.addf %2, %4 : vector<8x64xf32>
    %cst_5 = arith.constant 0.000000e+00 : f32
    %6 = vector.broadcast %cst_5 : f32 to vector<8x64xf32>
    %7 = arith.maximumf %5, %6 : vector<8x64xf32>
    %c0_6 = arith.constant 0 : index
    %c0_7 = arith.constant 0 : index
    %8 = vector.load %arg4[%c0_6, %c0_7] : memref<64x64xf32, #tpu.memory_space<vmem>>, vector<64x64xf32>
    %cst_8 = arith.constant dense<0.000000e+00> : vector<8x64xf32>
    %9 = tpu.matmul %7, %8, %cst_8 {dimension_numbers = #tpu.dot_dimension_numbers<[1], [0], [0], [1], [0, 0, 1, 1], [], []>} : vector<8x64xf32>, vector<64x64xf32>, vector<8x64xf32> -> vector<8x64xf32>
    %c0_9 = arith.constant 0 : index
    %c0_10 = arith.constant 0 : index
    %10 = vector.load %arg5[%c0_9, %c0_10] : memref<1x64xf32, #tpu.memory_space<vmem>>, vector<1x64xf32>
    %11 = vector.broadcast %10 : vector<1x64xf32> to vector<8x64xf32>
    %12 = arith.addf %9, %11 : vector<8x64xf32>
    %cst_11 = arith.constant 0.000000e+00 : f32
    %13 = vector.broadcast %cst_11 : f32 to vector<8x64xf32>
    %14 = arith.maximumf %12, %13 : vector<8x64xf32>
    %c0_12 = arith.constant 0 : index
    %c0_13 = arith.constant 0 : index
    %15 = vector.load %arg6[%c0_12, %c0_13] : memref<64x128xf32, #tpu.memory_space<vmem>>, vector<64x128xf32>
    %cst_14 = arith.constant dense<0.000000e+00> : vector<8x128xf32>
    %16 = tpu.matmul %14, %15, %cst_14 {dimension_numbers = #tpu.dot_dimension_numbers<[1], [0], [0], [1], [0, 0, 1, 1], [], []>} : vector<8x64xf32>, vector<64x128xf32>, vector<8x128xf32> -> vector<8x128xf32>
    %c0_15 = arith.constant 0 : index
    %c0_16 = arith.constant 0 : index
    %17 = vector.load %arg7[%c0_15, %c0_16] : memref<1x128xf32, #tpu.memory_space<vmem>>, vector<1x128xf32>
    %18 = vector.broadcast %17 : vector<1x128xf32> to vector<8x128xf32>
    %19 = arith.addf %16, %18 : vector<8x128xf32>
    %c0_17 = arith.constant 0 : index
    %c0_18 = arith.constant 0 : index
    %20 = vector.load %arg8[%c0_17, %c0_18] : memref<8x128xf32, #tpu.memory_space<vmem>>, vector<8x128xf32>
    tpu.vector_store %arg8[%c0_17, %c0_18], %19 {strides = array<i32>} : memref<8x128xf32, #tpu.memory_space<vmem>>, vector<8x128xf32>,
    return
  }
  func.func @transform_0(%arg0: i32) -> (i32, i32) {
    %c0_i32 = arith.constant 0 : i32
    %c0_i32_0 = arith.constant 0 : i32
    return %arg0, %c0_i32 : i32, i32
  }
  func.func @transform_1(%arg0: i32) -> (i32, i32) {
    %c0_i32 = arith.constant 0 : i32
    %c0_i32_0 = arith.constant 0 : i32
    %c0_i32_1 = arith.constant 0 : i32
    return %c0_i32, %c0_i32_0 : i32, i32
  }
  func.func @transform_2(%arg0: i32) -> (i32, i32) {
    %c0_i32 = arith.constant 0 : i32
    %c0_i32_0 = arith.constant 0 : i32
    %c0_i32_1 = arith.constant 0 : i32
    return %c0_i32, %c0_i32_0 : i32, i32
  }
  func.func @transform_3(%arg0: i32) -> (i32, i32) {
    %c0_i32 = arith.constant 0 : i32
    %c0_i32_0 = arith.constant 0 : i32
    %c0_i32_1 = arith.constant 0 : i32
    return %c0_i32, %c0_i32_0 : i32, i32
  }
  func.func @transform_4(%arg0: i32) -> (i32, i32) {
    %c0_i32 = arith.constant 0 : i32
    %c0_i32_0 = arith.constant 0 : i32
    %c0_i32_1 = arith.constant 0 : i32
    return %c0_i32, %c0_i32_0 : i32, i32
  }
  func.func @transform_5(%arg0: i32) -> (i32, i32) {
    %c0_i32 = arith.constant 0 : i32
    %c0_i32_0 = arith.constant 0 : i32
    %c0_i32_1 = arith.constant 0 : i32
    return %c0_i32, %c0_i32_0 : i32, i32
  }
  func.func @transform_6(%arg0: i32) -> (i32, i32) {
    %c0_i32 = arith.constant 0 : i32
    %c0_i32_0 = arith.constant 0 : i32
    %c0_i32_1 = arith.constant 0 : i32
    return %c0_i32, %c0_i32_0 : i32, i32
  }
  func.func @transform_7(%arg0: i32) -> (i32, i32) {
    %c0_i32 = arith.constant 0 : i32
    %c0_i32_0 = arith.constant 0 : i32
    return %arg0, %c0_i32 : i32, i32
  }
}

</mosaic_0001>

<bundles_post_ra>
// kernel: tpu_custom_call.1
= control target key start
LH: loop header
LB: loop body
LE: loop exit
PB: predicated region body
PF: predicated region fallthrough
CT: control target
= control target key end

     0   :  { %12 = vsyncpa [#allocation3], 0  ;;  %s866_s0 = inlined_call_operand.hbm [shape: f32[8,32], index: 0, kind: input, shape index: {}]   ;;  %s867_s1 = inlined_call_operand.hbm [shape: f32[32,64], index: 1, kind: input, shape index: {}]   ;;  %s868_s2 = inlined_call_operand.hbm [shape: f32[1,64], index: 2, kind: input, shape index: {}]   ;;  %s869_s3 = inlined_call_operand.hbm [shape: f32[64,64], index: 3, kind: input, shape index: {}]   ;;  %s870_s4 = inlined_call_operand.hbm [shape: f32[1,64], index: 4, kind: input, shape index: {}]   ;;  %s871_s5 = inlined_call_operand.hbm [shape: f32[64,128], index: 5, kind: input, shape index: {}]   ;;  %s872_s6 = inlined_call_operand.hbm [shape: f32[1,128], index: 6, kind: input, shape index: {}]   ;;  %s873_s7 = inlined_call_operand.hbm [shape: f32[8,128], index: 7, kind: output, shape index: {}]  }
   0x1   :  { %13 = vsyncpa [#allocation6], 0 }
   0x2   :  { %14 = vsyncpa [#allocation9], 0 }
   0x3   :  { %15 = vsyncpa [#allocation12], 0 }
   0x4   :  { %16 = vsyncpa [#allocation4], 0  ;;  %s705_s24 = smov [#allocation5]   ;;  %s519_s28 = scalar_lea.hbm %s867_s1, 512 }
   0x5   :  { %s32_s25 = sshll.u32 %s705_s24, 4  ;;  %p520_p0 = scmp.ne.s32.totalorder %s867_s1, %s519_s28  ;;  %s33_s25 = int_to_ptr.vmem [resolvable:$true] %s32_s25 }
   0x6   :  { %p523_p1 = scmp.lt.u32.totalorder %s519_s28, %s867_s1 }
   0x8   :  { %p525_p2 = pnand %p523_p1, %p520_p0 }
   0xa   :  { %528 = shalt.err (!%p525_p2)
}
   0xb   :  { %s529_s10 = scalar_lea.vmem %s33_s25, 512  ;;  %p534_p4 = scmp.lt.s32.totalorder %s33_s25, %s33_s25 }
   0xc   :  { %p530_p3 = scmp.ne.s32.totalorder %s33_s25, %s529_s10  ;;  %p535_p5 = scmp.lt.s32.totalorder %s529_s10, %s529_s10 }
   0xe   :  { %p536_p6 = por %p535_p5, %p534_p4 }
  0x10   :  { %p537_p7 = pnand %p536_p6, %p530_p3 }
  0x12   :  { %540 = shalt.err (!%p537_p7)
}
  0x13   :  { %s706_s11 = smov 128   ;;  %s707_s12 = smov 8  }
  0x14   :  { %38 = dma.hbm_to_vmem [thread:$0]  %s867_s1, 512, %s33_s25, [#allocation6], %s706_s11, %s706_s11, %s707_s12  }
  0x15   :  { %s708_s15 = smov [#allocation8]   ;;  %s709_s17 = smov [#allocation11]  }
  0x16   :  { %s54_s16 = sshll.u32 %s708_s15, 4  ;;  %s76_s18 = sshll.u32 %s709_s17, 4  ;;  %s55_s16 = int_to_ptr.vmem [resolvable:$true] %s54_s16  ;;  %s77_s18 = int_to_ptr.vmem [resolvable:$true] %s76_s18 }
  0x17   :  { %s541_s21 = scalar_lea.hbm %s869_s3, 1024 }
  0x18   :  { %p542_p8 = scmp.ne.s32.totalorder %s869_s3, %s541_s21  ;;  %p545_p9 = scmp.lt.u32.totalorder %s541_s21, %s869_s3 }
  0x1a   :  { %p547_p10 = pnand %p545_p9, %p542_p8 }
  0x1c   :  { %550 = shalt.err (!%p547_p10)
}
  0x1d   :  { %s551_s1 = scalar_lea.vmem %s55_s16, 1024  ;;  %p556_p12 = scmp.lt.s32.totalorder %s55_s16, %s55_s16 }
  0x1e   :  { %p552_p11 = scmp.ne.s32.totalorder %s55_s16, %s551_s1  ;;  %p557_p13 = scmp.lt.s32.totalorder %s551_s1, %s551_s1 }
  0x20   :  { %p558_p0 = por %p557_p13, %p556_p12 }
  0x22   :  { %p559_p1 = pnand %p558_p0, %p552_p11 }
  0x24   :  { %562 = shalt.err (!%p559_p1)
}
  0x25   :  { %60 = dma.hbm_to_vmem [thread:$0]  %s869_s3, 1024, %s55_s16, [#allocation9], %s706_s11, %s706_s11, %s707_s12  }
  0x26   :  { %s563_s30 = scalar_lea.hbm %s871_s5, 1024 }
  0x27   :  { %p564_p2 = scmp.ne.s32.totalorder %s871_s5, %s563_s30  ;;  %p567_p3 = scmp.lt.u32.totalorder %s563_s30, %s871_s5 }
  0x29   :  { %p569_p4 = pnand %p567_p3, %p564_p2 }
  0x2b   :  { %572 = shalt.err (!%p569_p4)
}
  0x2c   :  { %s573_s14 = scalar_lea.vmem %s77_s18, 1024  ;;  %p578_p6 = scmp.lt.s32.totalorder %s77_s18, %s77_s18 }
  0x2d   :  { %p574_p5 = scmp.ne.s32.totalorder %s77_s18, %s573_s14  ;;  %p579_p7 = scmp.lt.s32.totalorder %s573_s14, %s573_s14 }
  0x2f   :  { %p580_p8 = por %p579_p7, %p578_p6 }
  0x31   :  { %p581_p9 = pnand %p580_p8, %p574_p5 }
  0x33   :  { %584 = shalt.err (!%p581_p9)
}
  0x34   :  { %82 = dma.hbm_to_vmem [thread:$0]  %s871_s5, 1024, %s77_s18, [#allocation12], %s706_s11, %s706_s11, %s707_s12  }
  0x35   :  { %s710_s16 = smov [#allocation2]   ;;  %s711_s19 = smov [#allocation7]  }
  0x36   :  { %s23_s17 = sshll.u32 %s710_s16, 4  ;;  %s45_s20 = sshll.u32 %s711_s19, 4  ;;  %s24_s17 = int_to_ptr.vmem [resolvable:$true] %s23_s17  ;;  %s46_s20 = int_to_ptr.vmem [resolvable:$true] %s45_s20 }
  0x37   :  { %s585_s23 = scalar_lea.hbm %s866_s0, 128 }
  0x38   :  { %p586_p10 = scmp.ne.s32.totalorder %s866_s0, %s585_s23  ;;  %p589_p11 = scmp.lt.u32.totalorder %s585_s23, %s866_s0 }
  0x3a   :  { %p591_p12 = pnand %p589_p11, %p586_p10 }
  0x3c   :  { %594 = shalt.err (!%p591_p12)
}
  0x3d   :  { %s595_s5 = scalar_lea.vmem %s24_s17, 128  ;;  %p600_p0 = scmp.lt.s32.totalorder %s24_s17, %s24_s17 }
  0x3e   :  { %p596_p13 = scmp.ne.s32.totalorder %s24_s17, %s595_s5  ;;  %p601_p1 = scmp.lt.s32.totalorder %s595_s5, %s595_s5 }
  0x40   :  { %p602_p2 = por %p601_p1, %p600_p0 }
  0x42   :  { %p603_p3 = pnand %p602_p2, %p596_p13 }
  0x44   :  { %606 = shalt.err (!%p603_p3)
}
  0x45   :  { %26 = dma.hbm_to_vmem [thread:$0]  %s866_s0, 128, %s24_s17, [#allocation3]  }
  0x46   :  { %s607_s28 = scalar_lea.hbm %s868_s2, 16 }
  0x47   :  { %p608_p4 = scmp.ne.s32.totalorder %s868_s2, %s607_s28  ;;  %p611_p5 = scmp.lt.u32.totalorder %s607_s28, %s868_s2 }
  0x49   :  { %p613_p6 = pnand %p611_p5, %p608_p4 }
  0x4b   :  { %616 = shalt.err (!%p613_p6)
}
  0x4c   :  { %s617_s10 = scalar_lea.vmem %s46_s20, 16  ;;  %s621_s13 = scalar_lea.vmem %s46_s20, 32 }
  0x4d   :  { %p618_p7 = scmp.ne.s32.totalorder %s46_s20, %s617_s10  ;;  %p622_p8 = scmp.lt.s32.totalorder %s46_s20, %s46_s20 }
  0x4e   :  { %p623_p9 = scmp.lt.s32.totalorder %s621_s13, %s617_s10 }
  0x50   :  { %p624_p10 = por %p623_p9, %p622_p8 }
  0x52   :  { %p625_p11 = pnand %p624_p10, %p618_p7 }
  0x54   :  { %628 = shalt.err (!%p625_p11)
}
  0x55   :  { %48 = dma.hbm_to_vmem [thread:$0]  %s868_s2, 16, %s46_s20, [#allocation6]  }
  0x56   :  { %s712_s3 = smov [#allocation10]   ;;  %s713_s16 = smov [#allocation13]  }
  0x57   :  { %s67_s15 = sshll.u32 %s712_s3, 4  ;;  %s89_s17 = sshll.u32 %s713_s16, 4  ;;  %s68_s15 = int_to_ptr.vmem [resolvable:$true] %s67_s15  ;;  %s90_s17 = int_to_ptr.vmem [resolvable:$true] %s89_s17 }
  0x58   :  { %s629_s22 = scalar_lea.hbm %s870_s4, 16 }
  0x59   :  { %p630_p12 = scmp.ne.s32.totalorder %s870_s4, %s629_s22  ;;  %p633_p13 = scmp.lt.u32.totalorder %s629_s22, %s870_s4 }
  0x5b   :  { %p635_p0 = pnand %p633_p13, %p630_p12 }
  0x5d   :  { %638 = shalt.err (!%p635_p0)
}
  0x5e   :  { %s639_s2 = scalar_lea.vmem %s68_s15, 16  ;;  %s643_s20 = scalar_lea.vmem %s68_s15, 32 }
  0x5f   :  { %p640_p1 = scmp.ne.s32.totalorder %s68_s15, %s639_s2  ;;  %p644_p2 = scmp.lt.s32.totalorder %s68_s15, %s68_s15 }
  0x60   :  { %p645_p3 = scmp.lt.s32.totalorder %s643_s20, %s639_s2 }
  0x62   :  { %p646_p4 = por %p645_p3, %p644_p2 }
  0x64   :  { %p647_p5 = pnand %p646_p4, %p640_p1 }
  0x66   :  { %650 = shalt.err (!%p647_p5)
}
  0x67   :  { %70 = dma.hbm_to_vmem [thread:$0]  %s870_s4, 16, %s68_s15, [#allocation9]  }
  0x68   :  { %s651_s18 = scalar_lea.hbm %s872_s6, 16 }
  0x69   :  { %p652_p6 = scmp.ne.s32.totalorder %s872_s6, %s651_s18  ;;  %p655_p7 = scmp.lt.u32.totalorder %s651_s18, %s872_s6 }
  0x6b   :  { %p657_p8 = pnand %p655_p7, %p652_p6 }
  0x6d   :  { %660 = shalt.err (!%p657_p8)
}
  0x6e   :  { %s661_s8 = scalar_lea.vmem %s90_s17, 16  ;;  %s665_s9 = scalar_lea.vmem %s90_s17, 32 }
  0x6f   :  { %p662_p9 = scmp.ne.s32.totalorder %s90_s17, %s661_s8  ;;  %p666_p10 = scmp.lt.s32.totalorder %s90_s17, %s90_s17 }
  0x70   :  { %p667_p11 = scmp.lt.s32.totalorder %s665_s9, %s661_s8 }
  0x72   :  { %p668_p12 = por %p667_p11, %p666_p10 }
  0x74   :  { %p669_p13 = pnand %p668_p12, %p662_p9 }
  0x76   :  { %672 = shalt.err (!%p669_p13)
}
  0x77   :  { %92 = dma.hbm_to_vmem [thread:$0]  %s872_s6, 16, %s90_s17, [#allocation12]  }
  0x78   :  { %695 = dma.done.wait [#allocation3], 128  }
  0x79   :  { %696 = vsyncadd [#allocation3], 4294967168 }
  0x7a   :  { %697 = dma.done.wait [#allocation6], 528  }
  0x7b   :  { %698 = vsyncadd [#allocation6], 4294966768 }
  0x7c   :  { %699 = dma.done.wait [#allocation9], 1040  }
  0x7d   :  { %700 = vsyncadd [#allocation9], 4294966256 }
  0x7e   :  { %701 = dma.done.wait [#allocation12], 1040  }
  0x7f   :  { %702 = vsyncadd [#allocation12], 4294966256  ;;  %v714_v0 = vmov 0.0|0.0   ;;  %vm715_vm0 = vmmov 0   ;;  %v716_v1 = vmov 0.0   ;;  %v115_v2 = vld [vmem:[#allocation5] sm:$0xff] }
  0x80   :  { %476 = vmatprep.subr.bf16.mxu0 %v714_v0  ;;  %435 = vmatprep.mubr.msk.f32.mxu0 %vm715_vm0, %v716_v1  ;;  %v116_v3 = vld [vmem:[#allocation5 + $0x8] sm:$0xff]  ;;  %v117_v4 = vld [vmem:[#allocation5 + $0x10] sm:$0xff]  ;;  %v118_v6 = vld [vmem:[#allocation5 + $0x18] sm:$0xff]  ;;  %vm126_vm1 = vcmask 261120   ;;  %vm216_vm2 = vcmask 523264   ;;  %s717_s6 = smov [#allocation14]  }
  0x81   :  { %482 = vmatprep.subr.bf16.mxu1 %v714_v0  ;;  %454 = vmatprep.mubr.msk.f32.mxu1 %vm715_vm0, %v716_v1  ;;  %v477_v5 = vpack.c.bf16 %v116_v3, %v115_v2  ;;  %v201_v7 = vld [vmem:[#allocation8] sm:$0xff]  ;;  %v202_v8 = vld [vmem:[#allocation8 + $0x8] sm:$0xff]  ;;  %v203_v9 = vld [vmem:[#allocation8 + $0x10] sm:$0xff]  ;;  %v480_v11 = vpack.c.bf16 %v118_v6, %v117_v4  ;;  %s386_s13 = sshll.u32 %s717_s6, 4  ;;  %s387_s13 = int_to_ptr.vmem [resolvable:$true] %s386_s13 }
  0x82   :  { %v204_v10 = vld [vmem:[#allocation8 + $0x18] sm:$0xff]  ;;  %v483_v12 = vpack.c.bf16 %v202_v8, %v201_v7  ;;  %v205_v14 = vld [vmem:[#allocation8 + $0x20] sm:$0xff]  ;;  %v206_v15 = vld [vmem:[#allocation8 + $0x28] sm:$0xff]  ;;  %s673_s0 = scalar_lea.vmem %s387_s13, 128  ;;  %p678_p1 = scmp.lt.s32.totalorder %s387_s13, %s387_s13 }
  0x83   :  { %478 = vmatpush3.bf16.msra.mxu0 %v477_v5  ;;  %v486_v13 = vpack.c.bf16 %v204_v10, %v203_v9  ;;  %v114_v16 = vld [vmem:[#allocation2] sm:$0xff]  ;;  %v489_v17 = vpack.c.bf16 %v206_v15, %v205_v14  ;;  %v291_v21 = vld [vmem:[#allocation11] sm:$0xff]  ;;  %v292_v22 = vld [vmem:[#allocation11 + $0x8] sm:$0xff]  ;;  %p674_p0 = scmp.ne.s32.totalorder %s387_s13, %s673_s0  ;;  %p679_p2 = scmp.lt.s32.totalorder %s673_s0, %s673_s0 }
  0x84   :  { %479 = vmatprep.subr.bf16.mxu0 %v714_v0  ;;  %484 = vmatpush3.bf16.msra.mxu1 %v483_v12  ;;  %v207_v18 = vld [vmem:[#allocation8 + $0x30] sm:$0xff]  ;;  %v208_v19 = vld [vmem:[#allocation8 + $0x38] sm:$0xff]  ;;  %v495_v24 = vpack.c.bf16 %v292_v22, %v291_v21  ;;  %v295_v27 = vld [vmem:[#allocation11 + $0x20] sm:$0xff] }
  0x85   :  { %485 = vmatprep.subr.bf16.mxu1 %v714_v0  ;;  %v492_v20 = vpack.c.bf16 %v208_v19, %v207_v18  ;;  %v293_v23 = vld [vmem:[#allocation11 + $0x10] sm:$0xff]  ;;  %v294_v25 = vld [vmem:[#allocation11 + $0x18] sm:$0xff]  ;;  %v296_v28 = vld [vmem:[#allocation11 + $0x28] sm:$0xff]  ;;  %p680_p3 = por %p679_p2, %p678_p1 }
  0x86   :  { %v498_v26 = vpack.c.bf16 %v294_v25, %v293_v23  ;;  %v501_v29 = vpack.c.bf16 %v296_v28, %v295_v27  ;;  %v398_v30 = vld [vmem:[#allocation7] ss:$0 sm:$0xff]  ;;  %v297_v35 = vld [vmem:[#allocation11 + $0x30] sm:$0xff]  ;;  %v400_v38 = vld [vmem:[#allocation10] ss:$0 sm:$0xff] }
  0x87   :  { %481 = vmatpush3.bf16.msra.mxu0 %v480_v11  ;;  %v298_v36 = vld [vmem:[#allocation11 + $0x38] sm:$0xff]  ;;  %v402_v43 = vld [vmem:[#allocation13] ss:$0 sm:$0xff]  ;;  %p681_p4 = pnand %p680_p3, %p674_p0 }
  0x88   :  { %494 = vmatprep.subr.bf16.mxu0 %v714_v0  ;;  %487 = vmatpush3.bf16.msra.mxu1 %v486_v13  ;;  %v504_v37 = vpack.c.bf16 %v298_v36, %v297_v35 }
  0x89   :  { %488 = vmatprep.subr.bf16.mxu1 %v714_v0 }
  0x8a   :  { %436 = vmatmul.mubr.msk.f32.vlgmr.msra.gmra.mrb[0].mxu0 %vm126_vm1, %v114_v16 }
  0x8b   :  { %473 = vmatprep.mubr.msk.f32.mxu0 %vm715_vm0, %v716_v1  ;;  %496 = vmatpush3.bf16.msra.mxu0 %v495_v24 }
  0x8c   :  { %490 = vmatpush3.bf16.msra.mxu1 %v489_v17  ;;  %497 = vmatprep.subr.bf16.mxu0 %v714_v0 }
  0x8d   :  { %491 = vmatprep.subr.bf16.mxu1 %v714_v0 }
  0x8f   :  { %499 = vmatpush3.bf16.msra.mxu0 %v498_v26 }
  0x90   :  { %493 = vmatpush3.bf16.msra.mxu1 %v492_v20  ;;  %500 = vmatprep.subr.bf16.mxu0 %v714_v0 }
  0x93   :  { %502 = vmatpush3.bf16.msra.mxu0 %v501_v29 }
  0x94   :  { %503 = vmatprep.subr.bf16.mxu0 %v714_v0 }
  0x97   :  { %505 = vmatpush3.bf16.msra.mxu0 %v504_v37 }
 0x15d   :  { %v196_v31 = vpop.f32.mrb[0].mxu0 }
 0x15e   :  { %v197_v32 = vadd.f32 %v398_v30, %v196_v31  ;;  %v437_v33 = vpop.f32.mrb[1].mxu0 }
 0x160   :  { %v200_v34 = vmax.f32 %v197_v32, 0.0 }
 0x162   :  { %455 = vmatmul.mubr.msk.f32.vlgmr.msra.gmra.mrb[0].mxu1 %vm216_vm2, %v200_v34 }
 0x235   :  { %v286_v39 = vpop.f32.mrb[0].mxu1 }
 0x236   :  { %v287_v40 = vadd.f32 %v400_v38, %v286_v39  ;;  %v456_v41 = vpop.f32.mrb[1].mxu1 }
 0x238   :  { %v290_v42 = vmax.f32 %v287_v40, 0.0 }
 0x23a   :  { %474 = vmatmul.mubr.msk.f32.vlgmr.msra.gmra.mrb[2].mxu0 %vm216_vm2, %v290_v42 }
 0x30d   :  { %v375_v44 = vpop.f32.mrb[2].mxu0 }
 0x30e   :  { %v376_v45 = vadd.f32 %v402_v43, %v375_v44  ;;  %v475_v46 = vpop.f32.mrb[3].mxu0 }
 0x310   :  { %379 = vst [vmem:[#allocation14] sm:$0xff] %v376_v45 }
 0x311   :  { %684 = shalt.err (!%p681_p4)
}
 0x312   :  { %s685_s15 = scalar_lea.hbm %s873_s7, 128 }
 0x313   :  { %p686_p5 = scmp.ne.s32.totalorder %s873_s7, %s685_s15  ;;  %p689_p6 = scmp.lt.u32.totalorder %s685_s15, %s873_s7 }
 0x315   :  { %p691_p7 = pnand %p689_p6, %p686_p5 }
 0x317   :  { %694 = shalt.err (!%p691_p7)
}
 0x318   :  { %389 = dma.vmem_to_hbm [thread:$0]  %s387_s13, 128, %s873_s7, [#allocation4]  }
 0x319   :  { %703 = dma.done.wait [#allocation4], 128  }
 0x31a   :  { %704 = vsyncadd [#allocation4], 4294967168 }
 0x31b   :  { %393 = vsyncpa [#allocation3], 1 }
 0x31c   :  { %394 = vsyncpa [#allocation6], 1 }
 0x31d   :  { %395 = vsyncpa [#allocation9], 1 }
 0x31e   :  { %396 = vsyncpa [#allocation12], 1 }
 0x31f   :  { %397 = vsyncpa [#allocation4], 1 }

</bundles_post_ra>
